<compile_context>
chip_gen: v7x
topology: tpu7x:2x2x1
jax: 0.10.0
libtpu: 0.0.40
codegen_flags: <defaults>
</compile_context>

<pallas_src>
import jax
import jax.numpy as jnp
from jax.experimental import pallas as pl
from jax.experimental.pallas import tpu as pltpu


def _mean_conv_kernel(x_ref, w_ref, b_ref, o_ref):
    # x_ref: [C, HW]     (batch dim squeezed by the BlockSpec)
    # w_ref: [Cout, C]   (already scaled by 1/(H*W))
    # b_ref: [1, Cout]
    # o_ref: [1, Cout]
    z = jnp.dot(w_ref[...], x_ref[...],
                preferred_element_type=jnp.float32)            # [Cout, HW] on MXU
    y = jnp.sum(z, axis=-1)[None, :]                           # [1, Cout] tiny lane reduce
    o_ref[...] = (y + b_ref[...]).astype(o_ref.dtype)


def mean_conv2d_1x1(x_nchw, weight_oihw, bias):
    """Equivalent of x.mean((2,3), keepdim=True) followed by a 1x1 Conv2d.

    Args:
      x_nchw:      [N, Cin, H, W] float32
      weight_oihw: [Cout, Cin, 1, 1] float32 (PyTorch conv layout)
      bias:        [Cout] float32
    Returns:
      [N, Cout, 1, 1] float32
    """
    n, c, h, w = x_nchw.shape
    cout = weight_oihw.shape[0]
    hw = h * w

    x_flat = x_nchw.reshape(n, c, hw)                          # [N, C, HW]
    # Fold the 1/(H*W) mean scale into the weight; keep MXU-friendly [Cout, Cin].
    w_mat = (weight_oihw[:, :, 0, 0] / float(hw)).astype(jnp.float32)   # [Cout, Cin]
    b_mat = bias.reshape(1, cout).astype(jnp.float32)          # [1, Cout]

    cost = pl.CostEstimate(
        flops=n * (2 * cout * c * hw + cout * hw + cout),
        transcendentals=0,
        bytes_accessed=4 * (n * c * hw + cout * c + cout + n * cout),
    )

    out = pl.pallas_call(
        _mean_conv_kernel,
        out_shape=jax.ShapeDtypeStruct((n, cout), jnp.float32),
        grid=(n,),                                             # trivial for N=1
        in_specs=[
            pl.BlockSpec((None, c, hw), lambda i: (i, 0, 0)),  # squeeze batch dim
            pl.BlockSpec((cout, c), lambda i: (0, 0)),
            pl.BlockSpec((1, cout), lambda i: (0, 0)),
        ],
        out_specs=pl.BlockSpec((1, cout), lambda i: (i, 0)),
        compiler_params=pltpu.CompilerParams(
            dimension_semantics=("parallel",),
        ),
        cost_estimate=cost,
    )(x_flat, w_mat, b_mat)

    return out.reshape(n, cout, 1, 1)


if __name__ == "__main__":
    # Shapes taken directly from the PyTorch module (already small).
    N, CIN, H, W = 1, 672, 14, 14
    COUT = 28

    key = jax.random.PRNGKey(0)
    kx, kw, kb = jax.random.split(key, 3)

    x = jax.random.normal(kx, (N, CIN, H, W), dtype=jnp.float32)

    # Deterministic parameter init (kaiming-uniform-like bounds for a 1x1 conv).
    fan_in = CIN
    bound = 1.0 / (fan_in ** 0.5)
    weight = jax.random.uniform(
        kw, (COUT, CIN, 1, 1), minval=-bound, maxval=bound, dtype=jnp.float32
    )
    bias = jax.random.uniform(
        kb, (COUT,), minval=-bound, maxval=bound, dtype=jnp.float32
    )

    out = mean_conv2d_1x1(x, weight, bias)
    out = jax.block_until_ready(out)

    # Reference check with plain JAX.
    ref = (
        jnp.einsum("oc,nc->no", weight[:, :, 0, 0], x.mean(axis=(2, 3)))
        + bias[None, :]
    ).reshape(N, COUT, 1, 1)

    assert out.shape == (N, COUT, 1, 1), out.shape
    assert jnp.allclose(out, ref, atol=1e-4, rtol=1e-4), (
        float(jnp.max(jnp.abs(out - ref)))
    )
    print("KERNEL_OK")
</pallas_src>

<mosaic_0001>
module attributes {stable_mosaic.version = 11 : i64} {
  func.func @_mean_conv_kernel(%arg0: i32, %arg1: memref<1x672x196xf32, #tpu.memory_space<vmem>>, %arg2: memref<28x672xf32, #tpu.memory_space<vmem>>, %arg3: memref<1x28xf32, #tpu.memory_space<vmem>>, %arg4: memref<1x28xf32, #tpu.memory_space<vmem>>) attributes {dimension_semantics = [#tpu.dimension_semantics<parallel>], iteration_bounds = array<i64: 1>, scalar_prefetch = 0 : i64, scratch_operands = 0 : i64, tpu.core_type = #tpu.core_type<tc>, window_params = [{transform_indices = @transform_0, window_bounds = array<i64: 1, 672, 196>}, {pipeline_mode = #tpu.pipeline_mode<synchronous>, transform_indices = @transform_1, window_bounds = array<i64: 28, 672>}, {pipeline_mode = #tpu.pipeline_mode<synchronous>, transform_indices = @transform_2, window_bounds = array<i64: 1, 28>}, {transform_indices = @transform_3, window_bounds = array<i64: 1, 28>}]} {
    %c0 = arith.constant 0 : index
    %c0_0 = arith.constant 0 : index
    %0 = vector.load %arg2[%c0, %c0_0] : memref<28x672xf32, #tpu.memory_space<vmem>>, vector<28x672xf32>
    %c0_1 = arith.constant 0 : index
    %c0_2 = arith.constant 0 : index
    %c0_3 = arith.constant 0 : index
    %1 = vector.load %arg1[%c0_1, %c0_2, %c0_3] : memref<1x672x196xf32, #tpu.memory_space<vmem>>, vector<1x672x196xf32>
    %2 = vector.shape_cast %1 : vector<1x672x196xf32> to vector<672x196xf32>
    %cst = arith.constant dense<0.000000e+00> : vector<28x196xf32>
    %3 = tpu.matmul %0, %2, %cst {dimension_numbers = #tpu.dot_dimension_numbers<[1], [0], [0], [1], [0, 0, 1, 1], [], []>} : vector<28x672xf32>, vector<672x196xf32>, vector<28x196xf32> -> vector<28x196xf32>
    %cst_4 = arith.constant dense<0.000000e+00> : vector<28xf32>
    %4 = vector.multi_reduction <add>, %3, %cst_4 [1] : vector<28x196xf32> to vector<28xf32>
    %5 = vector.shape_cast %4 : vector<28xf32> to vector<1x28xf32>
    %c0_5 = arith.constant 0 : index
    %c0_6 = arith.constant 0 : index
    %6 = vector.load %arg3[%c0_5, %c0_6] : memref<1x28xf32, #tpu.memory_space<vmem>>, vector<1x28xf32>
    %7 = arith.addf %5, %6 : vector<1x28xf32>
    %c0_7 = arith.constant 0 : index
    %c0_8 = arith.constant 0 : index
    %8 = vector.load %arg4[%c0_7, %c0_8] : memref<1x28xf32, #tpu.memory_space<vmem>>, vector<1x28xf32>
    tpu.vector_store %arg4[%c0_7, %c0_8], %7 {strides = array<i32>} : memref<1x28xf32, #tpu.memory_space<vmem>>, vector<1x28xf32>,
    return
  }
  func.func @transform_0(%arg0: i32) -> (i32, i32, i32) {
    %c0_i32 = arith.constant 0 : i32
    %c0_i32_0 = arith.constant 0 : i32
    %c0_i32_1 = arith.constant 0 : i32
    return %arg0, %c0_i32, %c0_i32_0 : i32, i32, i32
  }
  func.func @transform_1(%arg0: i32) -> (i32, i32) {
    %c0_i32 = arith.constant 0 : i32
    %c0_i32_0 = arith.constant 0 : i32
    %c0_i32_1 = arith.constant 0 : i32
    return %c0_i32, %c0_i32_0 : i32, i32
  }
  func.func @transform_2(%arg0: i32) -> (i32, i32) {
    %c0_i32 = arith.constant 0 : i32
    %c0_i32_0 = arith.constant 0 : i32
    %c0_i32_1 = arith.constant 0 : i32
    return %c0_i32, %c0_i32_0 : i32, i32
  }
  func.func @transform_3(%arg0: i32) -> (i32, i32) {
    %c0_i32 = arith.constant 0 : i32
    %c0_i32_0 = arith.constant 0 : i32
    return %arg0, %c0_i32 : i32, i32
  }
}

</mosaic_0001>

<bundles_post_ra>
// kernel: tpu_custom_call.1
= control target key start
LH: loop header
LB: loop body
LE: loop exit
PB: predicated region body
PF: predicated region fallthrough
CT: control target
= control target key end

     0   :  { %s1453_s0 = inlined_call_operand.vmem [shape: f32[1,672,196], index: 0, kind: input, shape index: {}]   ;;  %s1454_s1 = inlined_call_operand.vmem [shape: f32[28,672], index: 1, kind: input, shape index: {}]   ;;  %s1455_s2 = inlined_call_operand.vmem [shape: f32[1,28], index: 2, kind: input, shape index: {}]   ;;  %s1456_s3 = inlined_call_operand.hbm [shape: f32[1,28], index: 3, kind: output, shape index: {}]  }
   0x1   :  { %v40_v0 = vld [vmem:[%s1453_s0 + $0x8] sm:$0xff]  ;;  %v42_v1 = vld [vmem:[%s1453_s0 + $0x18] sm:$0xff]  ;;  %v39_v5 = vld [vmem:[%s1453_s0] sm:$0xff] }
   0x2   :  { %v104_v2 = vld [vmem:[%s1453_s0 + $0x208] sm:$0xff]  ;;  %v601_v3 = vpack.c.bf16 %v42_v1, %v40_v0  ;;  %v106_v4 = vld [vmem:[%s1453_s0 + $0x218] sm:$0xff]  ;;  %v41_v6 = vld [vmem:[%s1453_s0 + $0x10] sm:$0xff] }
   0x3   :  { %v665_v7 = vpack.c.bf16 %v106_v4, %v104_v2  ;;  %v603_v8 = vpack.c.bf16 %v41_v6, %v39_v5  ;;  %v103_v9 = vld [vmem:[%s1453_s0 + $0x200] sm:$0xff]  ;;  %v105_v10 = vld [vmem:[%s1453_s0 + $0x210] sm:$0xff]  ;;  %v44_v11 = vld [vmem:[%s1453_s0 + $0x28] sm:$0xff] }
   0x4   :  { %602 = vmatprep.subr.bf16.mxu1 %v601_v3  ;;  %v667_v12 = vpack.c.bf16 %v105_v10, %v103_v9  ;;  %v46_v13 = vld [vmem:[%s1453_s0 + $0x38] sm:$0xff]  ;;  %v108_v14 = vld [vmem:[%s1453_s0 + $0x228] sm:$0xff]  ;;  %v43_v18 = vld [vmem:[%s1453_s0 + $0x20] sm:$0xff] }
   0x5   :  { %v110_v15 = vld [vmem:[%s1453_s0 + $0x238] sm:$0xff]  ;;  %666 = vmatprep.subr.bf16.mxu0 %v665_v7  ;;  %604 = vmatpush1.bf16.msra.mxu1 %v603_v8  ;;  %v605_v16 = vpack.c.bf16 %v46_v13, %v44_v11  ;;  %v45_v19 = vld [vmem:[%s1453_s0 + $0x30] sm:$0xff]  ;;  %v107_v20 = vld [vmem:[%s1453_s0 + $0x220] sm:$0xff] }
   0x6   :  { %v669_v17 = vpack.c.bf16 %v110_v15, %v108_v14  ;;  %668 = vmatpush1.bf16.msra.mxu0 %v667_v12  ;;  %v607_v21 = vpack.c.bf16 %v45_v19, %v43_v18  ;;  %v109_v22 = vld [vmem:[%s1453_s0 + $0x230] sm:$0xff]  ;;  %v48_v23 = vld [vmem:[%s1453_s0 + $0x48] sm:$0xff]  ;;  %v50_v24 = vld [vmem:[%s1453_s0 + $0x58] sm:$0xff] }
   0x7   :  { %606 = vmatprep.subr.bf16.mxu1 %v605_v16  ;;  %v671_v25 = vpack.c.bf16 %v109_v22, %v107_v20  ;;  %v609_v26 = vpack.c.bf16 %v50_v24, %v48_v23  ;;  %v112_v27 = vld [vmem:[%s1453_s0 + $0x248] sm:$0xff]  ;;  %v114_v28 = vld [vmem:[%s1453_s0 + $0x258] sm:$0xff]  ;;  %v47_v29 = vld [vmem:[%s1453_s0 + $0x40] sm:$0xff] }
   0x8   :  { %670 = vmatprep.subr.bf16.mxu0 %v669_v17  ;;  %v673_v30 = vpack.c.bf16 %v114_v28, %v112_v27  ;;  %v49_v31 = vld [vmem:[%s1453_s0 + $0x50] sm:$0xff]  ;;  %v111_v32 = vld [vmem:[%s1453_s0 + $0x240] sm:$0xff]  ;;  %v52_v35 = vld [vmem:[%s1453_s0 + $0x68] sm:$0xff] }
   0x9   :  { %v113_v33 = vld [vmem:[%s1453_s0 + $0x250] sm:$0xff]  ;;  %608 = vmatpush1.bf16.msra.mxu1 %v607_v21  ;;  %v611_v34 = vpack.c.bf16 %v49_v31, %v47_v29  ;;  %v54_v36 = vld [vmem:[%s1453_s0 + $0x78] sm:$0xff]  ;;  %v116_v37 = vld [vmem:[%s1453_s0 + $0x268] sm:$0xff] }
   0xa   :  { %672 = vmatpush1.bf16.msra.mxu0 %v671_v25  ;;  %610 = vmatprep.subr.bf16.mxu1 %v609_v26  ;;  %v675_v38 = vpack.c.bf16 %v113_v33, %v111_v32  ;;  %v613_v39 = vpack.c.bf16 %v54_v36, %v52_v35  ;;  %v118_v40 = vld [vmem:[%s1453_s0 + $0x278] sm:$0xff]  ;;  %v51_v41 = vld [vmem:[%s1453_s0 + $0x60] sm:$0xff]  ;;  %v53_v42 = vld [vmem:[%s1453_s0 + $0x70] sm:$0xff] }
   0xb   :  { %674 = vmatprep.subr.bf16.mxu0 %v673_v30  ;;  %v677_v43 = vpack.c.bf16 %v118_v40, %v116_v37  ;;  %v115_v44 = vld [vmem:[%s1453_s0 + $0x260] sm:$0xff]  ;;  %v117_v45 = vld [vmem:[%s1453_s0 + $0x270] sm:$0xff]  ;;  %v56_v46 = vld [vmem:[%s1453_s0 + $0x88] sm:$0xff]  ;;  %v615_v50 = vpack.c.bf16 %v53_v42, %v51_v41 }
   0xc   :  { %v58_v47 = vld [vmem:[%s1453_s0 + $0x98] sm:$0xff]  ;;  %v120_v48 = vld [vmem:[%s1453_s0 + $0x288] sm:$0xff]  ;;  %v679_v51 = vpack.c.bf16 %v117_v45, %v115_v44  ;;  %v55_v53 = vld [vmem:[%s1453_s0 + $0x80] sm:$0xff] }
   0xd   :  { %v122_v49 = vld [vmem:[%s1453_s0 + $0x298] sm:$0xff]  ;;  %612 = vmatpush1.bf16.msra.mxu1 %v611_v34  ;;  %v617_v52 = vpack.c.bf16 %v58_v47, %v56_v46  ;;  %v57_v54 = vld [vmem:[%s1453_s0 + $0x90] sm:$0xff]  ;;  %v119_v55 = vld [vmem:[%s1453_s0 + $0x280] sm:$0xff] }
   0xe   :  { %676 = vmatpush1.bf16.msra.mxu0 %v675_v38  ;;  %614 = vmatprep.subr.bf16.mxu1 %v613_v39  ;;  %v681_v56 = vpack.c.bf16 %v122_v49, %v120_v48  ;;  %v121_v57 = vld [vmem:[%s1453_s0 + $0x290] sm:$0xff]  ;;  %v60_v58 = vld [vmem:[%s1453_s0 + $0xa8] sm:$0xff]  ;;  %v62_v59 = vld [vmem:[%s1453_s0 + $0xb8] sm:$0xff]  ;;  %v619_v62 = vpack.c.bf16 %v57_v54, %v55_v53 }
   0xf   :  { %678 = vmatprep.subr.bf16.mxu0 %v677_v43  ;;  %v124_v60 = vld [vmem:[%s1453_s0 + $0x2a8] sm:$0xff]  ;;  %v126_v61 = vld [vmem:[%s1453_s0 + $0x2b8] sm:$0xff]  ;;  %v683_v63 = vpack.c.bf16 %v121_v57, %v119_v55  ;;  %v621_v0 = vpack.c.bf16 %v62_v59, %v60_v58  ;;  %v59_v1 = vld [vmem:[%s1453_s0 + $0xa0] sm:$0xff] }
  0x10   :  { %v61_v2 = vld [vmem:[%s1453_s0 + $0xb0] sm:$0xff]  ;;  %v123_v3 = vld [vmem:[%s1453_s0 + $0x2a0] sm:$0xff]  ;;  %v685_v4 = vpack.c.bf16 %v126_v61, %v124_v60  ;;  %v64_v6 = vld [vmem:[%s1453_s0 + $0xc8] sm:$0xff] }
  0x11   :  { %616 = vmatpush1.bf16.msra.mxu1 %v615_v50  ;;  %v125_v5 = vld [vmem:[%s1453_s0 + $0x2b0] sm:$0xff]  ;;  %v66_v7 = vld [vmem:[%s1453_s0 + $0xd8] sm:$0xff]  ;;  %v128_v8 = vld [vmem:[%s1453_s0 + $0x2c8] sm:$0xff]  ;;  %v623_v10 = vpack.c.bf16 %v61_v2, %v59_v1 }
  0x12   :  { %680 = vmatpush1.bf16.msra.mxu0 %v679_v51  ;;  %618 = vmatprep.subr.bf16.mxu1 %v617_v52  ;;  %v130_v9 = vld [vmem:[%s1453_s0 + $0x2d8] sm:$0xff]  ;;  %v687_v11 = vpack.c.bf16 %v125_v5, %v123_v3  ;;  %v625_v12 = vpack.c.bf16 %v66_v7, %v64_v6  ;;  %v63_v13 = vld [vmem:[%s1453_s0 + $0xc0] sm:$0xff]  ;;  %v65_v14 = vld [vmem:[%s1453_s0 + $0xd0] sm:$0xff] }
  0x13   :  { %682 = vmatprep.subr.bf16.mxu0 %v681_v56  ;;  %v127_v15 = vld [vmem:[%s1453_s0 + $0x2c0] sm:$0xff]  ;;  %v689_v16 = vpack.c.bf16 %v130_v9, %v128_v8  ;;  %v129_v17 = vld [vmem:[%s1453_s0 + $0x2d0] sm:$0xff]  ;;  %v68_v18 = vld [vmem:[%s1453_s0 + $0xe8] sm:$0xff]  ;;  %v627_v22 = vpack.c.bf16 %v65_v14, %v63_v13 }
  0x14   :  { %v70_v19 = vld [vmem:[%s1453_s0 + $0xf8] sm:$0xff]  ;;  %v132_v20 = vld [vmem:[%s1453_s0 + $0x2e8] sm:$0xff]  ;;  %v691_v23 = vpack.c.bf16 %v129_v17, %v127_v15  ;;  %v67_v25 = vld [vmem:[%s1453_s0 + $0xe0] sm:$0xff] }
  0x15   :  { %620 = vmatpush1.bf16.msra.mxu1 %v619_v62  ;;  %v134_v21 = vld [vmem:[%s1453_s0 + $0x2f8] sm:$0xff]  ;;  %v629_v24 = vpack.c.bf16 %v70_v19, %v68_v18  ;;  %v69_v26 = vld [vmem:[%s1453_s0 + $0xf0] sm:$0xff]  ;;  %v131_v27 = vld [vmem:[%s1453_s0 + $0x2e0] sm:$0xff] }
  0x16   :  { %684 = vmatpush1.bf16.msra.mxu0 %v683_v63  ;;  %622 = vmatprep.subr.bf16.mxu1 %v621_v0  ;;  %v693_v28 = vpack.c.bf16 %v134_v21, %v132_v20  ;;  %v133_v29 = vld [vmem:[%s1453_s0 + $0x2f0] sm:$0xff]  ;;  %v72_v30 = vld [vmem:[%s1453_s0 + $0x108] sm:$0xff]  ;;  %v74_v31 = vld [vmem:[%s1453_s0 + $0x118] sm:$0xff]  ;;  %v631_v34 = vpack.c.bf16 %v69_v26, %v67_v25 }
  0x17   :  { %686 = vmatprep.subr.bf16.mxu0 %v685_v4  ;;  %v136_v32 = vld [vmem:[%s1453_s0 + $0x308] sm:$0xff]  ;;  %v138_v33 = vld [vmem:[%s1453_s0 + $0x318] sm:$0xff]  ;;  %v695_v35 = vpack.c.bf16 %v133_v29, %v131_v27  ;;  %v633_v36 = vpack.c.bf16 %v74_v31, %v72_v30  ;;  %v71_v37 = vld [vmem:[%s1453_s0 + $0x100] sm:$0xff] }
  0x18   :  { %v73_v38 = vld [vmem:[%s1453_s0 + $0x110] sm:$0xff]  ;;  %v135_v39 = vld [vmem:[%s1453_s0 + $0x300] sm:$0xff]  ;;  %v697_v40 = vpack.c.bf16 %v138_v33, %v136_v32  ;;  %v76_v42 = vld [vmem:[%s1453_s0 + $0x128] sm:$0xff] }
  0x19   :  { %624 = vmatpush1.bf16.msra.mxu1 %v623_v10  ;;  %v137_v41 = vld [vmem:[%s1453_s0 + $0x310] sm:$0xff]  ;;  %v78_v43 = vld [vmem:[%s1453_s0 + $0x138] sm:$0xff]  ;;  %v140_v44 = vld [vmem:[%s1453_s0 + $0x328] sm:$0xff]  ;;  %v635_v46 = vpack.c.bf16 %v73_v38, %v71_v37 }
  0x1a   :  { %688 = vmatpush1.bf16.msra.mxu0 %v687_v11  ;;  %626 = vmatprep.subr.bf16.mxu1 %v625_v12  ;;  %v142_v45 = vld [vmem:[%s1453_s0 + $0x338] sm:$0xff]  ;;  %v699_v47 = vpack.c.bf16 %v137_v41, %v135_v39  ;;  %v637_v48 = vpack.c.bf16 %v78_v43, %v76_v42  ;;  %v75_v49 = vld [vmem:[%s1453_s0 + $0x120] sm:$0xff]  ;;  %v77_v50 = vld [vmem:[%s1453_s0 + $0x130] sm:$0xff] }
  0x1b   :  { %690 = vmatprep.subr.bf16.mxu0 %v689_v16  ;;  %v139_v51 = vld [vmem:[%s1453_s0 + $0x320] sm:$0xff]  ;;  %v701_v52 = vpack.c.bf16 %v142_v45, %v140_v44  ;;  %v141_v53 = vld [vmem:[%s1453_s0 + $0x330] sm:$0xff]  ;;  %v80_v54 = vld [vmem:[%s1453_s0 + $0x148] sm:$0xff]  ;;  %v639_v58 = vpack.c.bf16 %v77_v50, %v75_v49 }
  0x1c   :  { %v82_v55 = vld [vmem:[%s1453_s0 + $0x158] sm:$0xff]  ;;  %v144_v56 = vld [vmem:[%s1453_s0 + $0x348] sm:$0xff]  ;;  %v703_v59 = vpack.c.bf16 %v141_v53, %v139_v51  ;;  %v79_v61 = vld [vmem:[%s1453_s0 + $0x140] sm:$0xff] }
  0x1d   :  { %628 = vmatpush1.bf16.msra.mxu1 %v627_v22  ;;  %v146_v57 = vld [vmem:[%s1453_s0 + $0x358] sm:$0xff]  ;;  %v641_v60 = vpack.c.bf16 %v82_v55, %v80_v54  ;;  %v81_v62 = vld [vmem:[%s1453_s0 + $0x150] sm:$0xff]  ;;  %v143_v63 = vld [vmem:[%s1453_s0 + $0x340] sm:$0xff] }
  0x1e   :  { %692 = vmatpush1.bf16.msra.mxu0 %v691_v23  ;;  %630 = vmatprep.subr.bf16.mxu1 %v629_v24  ;;  %v705_v0 = vpack.c.bf16 %v146_v57, %v144_v56  ;;  %v145_v1 = vld [vmem:[%s1453_s0 + $0x350] sm:$0xff]  ;;  %v84_v2 = vld [vmem:[%s1453_s0 + $0x168] sm:$0xff]  ;;  %v86_v3 = vld [vmem:[%s1453_s0 + $0x178] sm:$0xff]  ;;  %v643_v6 = vpack.c.bf16 %v81_v62, %v79_v61 }
  0x1f   :  { %694 = vmatprep.subr.bf16.mxu0 %v693_v28  ;;  %v148_v4 = vld [vmem:[%s1453_s0 + $0x368] sm:$0xff]  ;;  %v150_v5 = vld [vmem:[%s1453_s0 + $0x378] sm:$0xff]  ;;  %v83_v7 = vld [vmem:[%s1453_s0 + $0x160] sm:$0xff]  ;;  %v707_v8 = vpack.c.bf16 %v145_v1, %v143_v63  ;;  %v645_v9 = vpack.c.bf16 %v86_v3, %v84_v2 }
  0x20   :  { %v85_v10 = vld [vmem:[%s1453_s0 + $0x170] sm:$0xff]  ;;  %v147_v11 = vld [vmem:[%s1453_s0 + $0x360] sm:$0xff]  ;;  %v709_v13 = vpack.c.bf16 %v150_v5, %v148_v4  ;;  %v88_v14 = vld [vmem:[%s1453_s0 + $0x188] sm:$0xff] }
  0x21   :  { %632 = vmatpush1.bf16.msra.mxu1 %v631_v34  ;;  %v149_v12 = vld [vmem:[%s1453_s0 + $0x370] sm:$0xff]  ;;  %v90_v15 = vld [vmem:[%s1453_s0 + $0x198] sm:$0xff]  ;;  %v16_v16 = vld [vmem:[%s1454_s1 + $0x8] sm:$0xff]  ;;  %v647_v20 = vpack.c.bf16 %v85_v10, %v83_v7 }
  0x22   :  { %696 = vmatpush1.bf16.msra.mxu0 %v695_v35  ;;  %634 = vmatprep.subr.bf16.mxu1 %v633_v36  ;;  %v152_v17 = vld [vmem:[%s1453_s0 + $0x388] sm:$0xff]  ;;  %v154_v18 = vld [vmem:[%s1453_s0 + $0x398] sm:$0xff]  ;;  %v711_v21 = vpack.c.bf16 %v149_v12, %v147_v11  ;;  %v649_v22 = vpack.c.bf16 %v90_v15, %v88_v14  ;;  %v87_v23 = vld [vmem:[%s1453_s0 + $0x180] sm:$0xff] }
  0x23   :  { %698 = vmatprep.subr.bf16.mxu0 %v697_v40  ;;  %284 = vmatprep.mubr.f32.mxu1 %v16_v16  ;;  %v18_v19 = vld [vmem:[%s1454_s1 + $0x18] sm:$0xff]  ;;  %v89_v24 = vld [vmem:[%s1453_s0 + $0x190] sm:$0xff]  ;;  %v151_v25 = vld [vmem:[%s1453_s0 + $0x380] sm:$0xff]  ;;  %v713_v26 = vpack.c.bf16 %v154_v18, %v152_v17 }
  0x24   :  { %373 = vmatprep.mubr.f32.mxu0 %v18_v19  ;;  %v153_v27 = vld [vmem:[%s1453_s0 + $0x390] sm:$0xff]  ;;  %v92_v28 = vld [vmem:[%s1453_s0 + $0x1a8] sm:$0xff]  ;;  %v94_v29 = vld [vmem:[%s1453_s0 + $0x1b8] sm:$0xff]  ;;  %v651_v32 = vpack.c.bf16 %v89_v24, %v87_v23 }
  0x25   :  { %636 = vmatpush1.bf16.msra.mxu1 %v635_v46  ;;  %v156_v30 = vld [vmem:[%s1453_s0 + $0x3a8] sm:$0xff]  ;;  %v158_v31 = vld [vmem:[%s1453_s0 + $0x3b8] sm:$0xff]  ;;  %v715_v33 = vpack.c.bf16 %v153_v27, %v151_v25  ;;  %v653_v34 = vpack.c.bf16 %v94_v29, %v92_v28  ;;  %v91_v35 = vld [vmem:[%s1453_s0 + $0x1a0] sm:$0xff] }
  0x26   :  { %700 = vmatpush1.bf16.msra.mxu0 %v699_v47  ;;  %638 = vmatprep.subr.bf16.mxu1 %v637_v48  ;;  %v93_v36 = vld [vmem:[%s1453_s0 + $0x1b0] sm:$0xff]  ;;  %v155_v37 = vld [vmem:[%s1453_s0 + $0x3a0] sm:$0xff]  ;;  %v717_v38 = vpack.c.bf16 %v158_v31, %v156_v30  ;;  %v96_v40 = vld [vmem:[%s1453_s0 + $0x1c8] sm:$0xff] }
  0x27   :  { %702 = vmatprep.subr.bf16.mxu0 %v701_v52  ;;  %v157_v39 = vld [vmem:[%s1453_s0 + $0x3b0] sm:$0xff]  ;;  %v98_v41 = vld [vmem:[%s1453_s0 + $0x1d8] sm:$0xff]  ;;  %v160_v42 = vld [vmem:[%s1453_s0 + $0x3c8] sm:$0xff]  ;;  %v655_v44 = vpack.c.bf16 %v93_v36, %v91_v35 }
  0x28   :  { %v162_v43 = vld [vmem:[%s1453_s0 + $0x3d8] sm:$0xff]  ;;  %v719_v45 = vpack.c.bf16 %v157_v39, %v155_v37  ;;  %v657_v46 = vpack.c.bf16 %v98_v41, %v96_v40  ;;  %v95_v47 = vld [vmem:[%s1453_s0 + $0x1c0] sm:$0xff]  ;;  %v97_v48 = vld [vmem:[%s1453_s0 + $0x1d0] sm:$0xff] }
  0x29   :  { %640 = vmatpush1.bf16.msra.mxu1 %v639_v58  ;;  %v159_v49 = vld [vmem:[%s1453_s0 + $0x3c0] sm:$0xff]  ;;  %v721_v50 = vpack.c.bf16 %v162_v43, %v160_v42  ;;  %v161_v51 = vld [vmem:[%s1453_s0 + $0x3d0] sm:$0xff]  ;;  %v100_v52 = vld [vmem:[%s1453_s0 + $0x1e8] sm:$0xff]  ;;  %v659_v56 = vpack.c.bf16 %v97_v48, %v95_v47 }
  0x2a   :  { %704 = vmatpush1.bf16.msra.mxu0 %v703_v59  ;;  %642 = vmatprep.subr.bf16.mxu1 %v641_v60  ;;  %v102_v53 = vld [vmem:[%s1453_s0 + $0x1f8] sm:$0xff]  ;;  %v164_v54 = vld [vmem:[%s1453_s0 + $0x3e8] sm:$0xff]  ;;  %v723_v57 = vpack.c.bf16 %v161_v51, %v159_v49  ;;  %v99_v59 = vld [vmem:[%s1453_s0 + $0x1e0] sm:$0xff] }
  0x2b   :  { %706 = vmatprep.subr.bf16.mxu0 %v705_v0  ;;  %v166_v55 = vld [vmem:[%s1453_s0 + $0x3f8] sm:$0xff]  ;;  %v661_v58 = vpack.c.bf16 %v102_v53, %v100_v52  ;;  %v101_v60 = vld [vmem:[%s1453_s0 + $0x1f0] sm:$0xff]  ;;  %v163_v61 = vld [vmem:[%s1453_s0 + $0x3e0] sm:$0xff] }
  0x2c   :  { %v725_v62 = vpack.c.bf16 %v166_v55, %v164_v54  ;;  %v165_v63 = vld [vmem:[%s1453_s0 + $0x3f0] sm:$0xff]  ;;  %v168_v0 = vld [vmem:[%s1453_s0 + $0x408] sm:$0xff]  ;;  %v170_v1 = vld [vmem:[%s1453_s0 + $0x418] sm:$0xff]  ;;  %v663_v2 = vpack.c.bf16 %v101_v60, %v99_v59 }
  0x2d   :  { %644 = vmatpush1.bf16.msra.mxu1 %v643_v6  ;;  %v727_v3 = vpack.c.bf16 %v165_v63, %v163_v61  ;;  %v729_v4 = vpack.c.bf16 %v170_v1, %v168_v0  ;;  %v167_v5 = vld [vmem:[%s1453_s0 + $0x400] sm:$0xff]  ;;  %v169_v6 = vld [vmem:[%s1453_s0 + $0x410] sm:$0xff]  ;;  %v172_v7 = vld [vmem:[%s1453_s0 + $0x428] sm:$0xff] }
  0x2e   :  { %708 = vmatpush1.bf16.msra.mxu0 %v707_v8  ;;  %646 = vmatprep.subr.bf16.mxu1 %v645_v9  ;;  %v174_v8 = vld [vmem:[%s1453_s0 + $0x438] sm:$0xff]  ;;  %v15_v9 = vld [vmem:[%s1454_s1] sm:$0xff]  ;;  %v731_v10 = vpack.c.bf16 %v169_v6, %v167_v5 }
  0x2f   :  { %710 = vmatprep.subr.bf16.mxu0 %v709_v13 }
  0x31   :  { %648 = vmatpush1.bf16.msra.mxu1 %v647_v20 }
  0x32   :  { %712 = vmatpush1.bf16.msra.mxu0 %v711_v21  ;;  %650 = vmatprep.subr.bf16.mxu1 %v649_v22 }
  0x33   :  { %714 = vmatprep.subr.bf16.mxu0 %v713_v26 }
  0x35   :  { %652 = vmatpush1.bf16.msra.mxu1 %v651_v32 }
  0x36   :  { %716 = vmatpush1.bf16.msra.mxu0 %v715_v33  ;;  %654 = vmatprep.subr.bf16.mxu1 %v653_v34 }
  0x37   :  { %718 = vmatprep.subr.bf16.mxu0 %v717_v38 }
  0x39   :  { %656 = vmatpush1.bf16.msra.mxu1 %v655_v44 }
  0x3a   :  { %720 = vmatpush1.bf16.msra.mxu0 %v719_v45  ;;  %658 = vmatprep.subr.bf16.mxu1 %v657_v46 }
  0x3b   :  { %722 = vmatprep.subr.bf16.mxu0 %v721_v50 }
  0x3d   :  { %660 = vmatpush1.bf16.msra.mxu1 %v659_v56 }
  0x3e   :  { %724 = vmatpush1.bf16.msra.mxu0 %v723_v57  ;;  %662 = vmatprep.subr.bf16.mxu1 %v661_v58 }
  0x3f   :  { %726 = vmatprep.subr.bf16.mxu0 %v725_v62 }
  0x41   :  { %664 = vmatpush1.bf16.msra.mxu1 %v663_v2 }
  0x42   :  { %8 = vsyncpa [#allocation3], 0  ;;  %728 = vmatpush1.bf16.msra.mxu0 %v727_v3  ;;  %769 = vmatprep.subr.bf16.mxu1 %v729_v4  ;;  %v17_v11 = vld [vmem:[%s1454_s1 + $0x10] sm:$0xff]  ;;  %v733_v12 = vpack.c.bf16 %v174_v8, %v172_v7  ;;  %v171_v13 = vld [vmem:[%s1453_s0 + $0x420] sm:$0xff]  ;;  %vm207_vm0 = vcmask 261120   ;;  %vm487_vm1 = vcmask 556032  }
  0x43   :  { %v173_v14 = vld [vmem:[%s1453_s0 + $0x430] sm:$0xff]  ;;  %730 = vmatprep.subr.bf16.mxu0 %v729_v4  ;;  %v176_v15 = vld [vmem:[%s1453_s0 + $0x448] sm:$0xff]  ;;  %v178_v16 = vld [vmem:[%s1453_s0 + $0x458] sm:$0xff]  ;;  %vm500_vm2 = vcmask 1043456   ;;  %vm502_vm3 = vcmask 551936   ;;  %vm563_vm4 = vcmask 130112  }
  0x44   :  { %285 = vmatmul.mubr.f32.vlgmr.msra.gmra.mrb[0].mxu1 %v15_v9  ;;  %v22_v17 = vld [vmem:[%s1454_s1 + $0x38] sm:$0xff]  ;;  %v735_v18 = vpack.c.bf16 %v173_v14, %v171_v13  ;;  %v24_v19 = vld [vmem:[%s1454_s1 + $0x48] sm:$0xff]  ;;  %v21_v20 = vld [vmem:[%s1454_s1 + $0x30] sm:$0xff]  ;;  %v737_v21 = vpack.c.bf16 %v178_v16, %v176_v15  ;;  %vm570_vm5 = vcmask 195712   ;;  %vm577_vm6 = vcmask 261312  }
  0x45   :  { %374 = vmatmul.mubr.f32.vlgmr.msra.gmra.mrb[0].mxu0 %v17_v11  ;;  %779 = vmatpush1.bf16.msra.mxu1 %v731_v10  ;;  %v175_v22 = vld [vmem:[%s1453_s0 + $0x440] sm:$0xff]  ;;  %v177_v23 = vld [vmem:[%s1453_s0 + $0x450] sm:$0xff]  ;;  %v180_v25 = vld [vmem:[%s1453_s0 + $0x468] sm:$0xff]  ;;  %vm580_vm7 = vcmask 221184  }
  0x46   :  { %732 = vmatpush1.bf16.msra.mxu0 %v731_v10  ;;  %770 = vmatprep.subr.bf16.mxu1 %v733_v12  ;;  %v23_v24 = vld [vmem:[%s1454_s1 + $0x40] sm:$0xff]  ;;  %v182_v26 = vld [vmem:[%s1453_s0 + $0x478] sm:$0xff]  ;;  %v28_v27 = vld [vmem:[%s1454_s1 + $0x68] sm:$0xff]  ;;  %v739_v28 = vpack.c.bf16 %v177_v23, %v175_v22 }
  0x47   :  { %734 = vmatprep.subr.bf16.mxu0 %v733_v12  ;;  %290 = vmatprep.mubr.f32.mxu1 %v22_v17  ;;  %v30_v29 = vld [vmem:[%s1454_s1 + $0x78] sm:$0xff]  ;;  %v27_v30 = vld [vmem:[%s1454_s1 + $0x60] sm:$0xff]  ;;  %v741_v31 = vpack.c.bf16 %v182_v26, %v180_v25  ;;  %v181_v33 = vld [vmem:[%s1453_s0 + $0x470] sm:$0xff] }
  0x48   :  { %379 = vmatprep.mubr.f32.mxu0 %v24_v19  ;;  %291 = vmatmul.mubr.f32.gmra.mrb[2].mxu1 %v21_v20  ;;  %v179_v32 = vld [vmem:[%s1453_s0 + $0x460] sm:$0xff]  ;;  %v29_v34 = vld [vmem:[%s1454_s1 + $0x70] sm:$0xff]  ;;  %v184_v35 = vld [vmem:[%s1453_s0 + $0x488] sm:$0xff] }
  0x49   :  { %780 = vmatpush1.bf16.msra.mxu1 %v735_v18  ;;  %380 = vmatmul.mubr.f32.gmra.mrb[2].mxu0 %v23_v24  ;;  %v186_v36 = vld [vmem:[%s1453_s0 + $0x498] sm:$0xff]  ;;  %v743_v38 = vpack.c.bf16 %v181_v33, %v179_v32  ;;  %v36_v39 = vld [vmem:[%s1454_s1 + $0xa8] sm:$0xf]  ;;  %v33_v40 = vld [vmem:[%s1454_s1 + $0x90] sm:$0xf] }
  0x4a   :  { %736 = vmatpush1.bf16.msra.mxu0 %v735_v18  ;;  %771 = vmatprep.subr.bf16.mxu1 %v737_v21  ;;  %v34_v37 = vld [vmem:[%s1454_s1 + $0x98] sm:$0xf]  ;;  %v745_v41 = vpack.c.bf16 %v186_v36, %v184_v35  ;;  %v183_v42 = vld [vmem:[%s1453_s0 + $0x480] sm:$0xff]  ;;  %v185_v43 = vld [vmem:[%s1453_s0 + $0x490] sm:$0xff] }
  0x4b   :  { %738 = vmatprep.subr.bf16.mxu0 %v737_v21  ;;  %296 = vmatprep.mubr.f32.mxu1 %v28_v27  ;;  %v35_v44 = vld [vmem:[%s1454_s1 + $0xa0] sm:$0xf]  ;;  %v188_v45 = vld [vmem:[%s1453_s0 + $0x4a8] sm:$0xff]  ;;  %v190_v46 = vld [vmem:[%s1453_s0 + $0x4b8] sm:$0xff]  ;;  %v747_v48 = vpack.c.bf16 %v185_v43, %v183_v42 }
  0x4c   :  { %385 = vmatprep.mubr.f32.mxu0 %v30_v29  ;;  %297 = vmatmul.mubr.f32.gmra.mrb[4].mxu1 %v27_v30  ;;  %v20_v47 = vld [vmem:[%s1454_s1 + $0x28] sm:$0xff]  ;;  %v749_v50 = vpack.c.bf16 %v190_v46, %v188_v45  ;;  %v187_v51 = vld [vmem:[%s1453_s0 + $0x4a0] sm:$0xff]  ;;  %v189_v52 = vld [vmem:[%s1453_s0 + $0x4b0] sm:$0xff] }
  0x4d   :  { %781 = vmatpush1.bf16.msra.mxu1 %v739_v28  ;;  %386 = vmatmul.mubr.f32.gmra.mrb[4].mxu0 %v29_v34  ;;  %v32_v49 = vld [vmem:[%s1454_s1 + $0x88] sm:$0xff]  ;;  %v194_v54 = vld [vmem:[%s1453_s0 + $0x4d8] sm:$0xff]  ;;  %v751_v55 = vpack.c.bf16 %v189_v52, %v187_v51  ;;  %v191_v57 = vld [vmem:[%s1453_s0 + $0x4c0] sm:$0xff] }
  0x4e   :  { %740 = vmatpush1.bf16.msra.mxu0 %v739_v28  ;;  %772 = vmatprep.subr.bf16.mxu1 %v741_v31  ;;  %v192_v53 = vld [vmem:[%s1453_s0 + $0x4c8] sm:$0xff]  ;;  %v193_v58 = vld [vmem:[%s1453_s0 + $0x4d0] sm:$0xff]  ;;  %v198_v60 = vld [vmem:[%s1453_s0 + $0x4f8] sm:$0xff] }
  0x4f   :  { %742 = vmatprep.subr.bf16.mxu0 %v741_v31  ;;  %302 = vmatprep.mubr.f32.mxu1 %v34_v37  ;;  %v753_v56 = vpack.c.bf16 %v194_v54, %v192_v53  ;;  %v196_v59 = vld [vmem:[%s1453_s0 + $0x4e8] sm:$0xff]  ;;  %v755_v61 = vpack.c.bf16 %v193_v58, %v191_v57  ;;  %v195_v63 = vld [vmem:[%s1453_s0 + $0x4e0] sm:$0xff]  ;;  %v197_v0 = vld [vmem:[%s1453_s0 + $0x4f0] sm:$0xff] }
  0x50   :  { %391 = vmatprep.mubr.f32.mxu0 %v36_v39  ;;  %303 = vmatmul.mubr.f32.gmra.mrb[6].mxu1 %v33_v40  ;;  %v757_v62 = vpack.c.bf16 %v198_v60, %v196_v59  ;;  %v200_v1 = vld [vmem:[%s1453_s0 + $0x508] sm:$0xff]  ;;  %v202_v2 = vld [vmem:[%s1453_s0 + $0x518] sm:$0xff]  ;;  %v759_v3 = vpack.c.bf16 %v197_v0, %v195_v63  ;;  %v199_v5 = vld [vmem:[%s1453_s0 + $0x500] sm:$0xff] }
  0x51   :  { %782 = vmatpush1.bf16.msra.mxu1 %v743_v38  ;;  %392 = vmatmul.mubr.f32.gmra.mrb[6].mxu0 %v35_v44  ;;  %v761_v4 = vpack.c.bf16 %v202_v2, %v200_v1  ;;  %v201_v6 = vld [vmem:[%s1453_s0 + $0x510] sm:$0xff]  ;;  %v204_v7 = vld [vmem:[%s1453_s0 + $0x528] sm:$0xff]  ;;  %v206_v8 = vld [vmem:[%s1453_s0 + $0x538] sm:$0xff] }
  0x52   :  { %744 = vmatpush1.bf16.msra.mxu0 %v743_v38  ;;  %773 = vmatprep.subr.bf16.mxu1 %v745_v41  ;;  %v763_v9 = vpack.c.bf16 %v201_v6, %v199_v5  ;;  %v765_v10 = vpack.c.bf16 %v206_v8, %v204_v7  ;;  %v203_v11 = vld [vmem:[%s1453_s0 + $0x520] sm:$0xff]  ;;  %v205_v12 = vld [vmem:[%s1453_s0 + $0x530] sm:$0xff]  ;;  %v38_v16 = vld [vmem:[%s1454_s1 + $0xb8] sm:$0xf] }
  0x53   :  { %746 = vmatprep.subr.bf16.mxu0 %v745_v41  ;;  %596 = vmatprep.mubr.msk.f32.mxu0 %vm207_vm0, %v20_v47  ;;  %v767_v13 = vpack.c.bf16 %v205_v12, %v203_v11  ;;  %v31_v14 = vld [vmem:[%s1454_s1 + $0x80] sm:$0xff]  ;;  %v26_v17 = vld [vmem:[%s1454_s1 + $0x58] sm:$0xff]  ;;  %v37_v18 = vld [vmem:[%s1454_s1 + $0xb0] sm:$0xf]  ;;  %v552_v11 = vlaneseq }
  0x54   :  { %598 = vmatprep.mubr.msk.f32.mxu1 %vm207_vm0, %v32_v49  ;;  %v19_v15 = vld [vmem:[%s1454_s1 + $0x20] sm:$0xff]  ;;  %v25_v19 = vld [vmem:[%s1454_s1 + $0x50] sm:$0xff] }
  0x55   :  { %783 = vmatpush1.bf16.msra.mxu1 %v747_v48  ;;  %v553_v12 = vand.u32 127, %v552_v11 }
  0x56   :  { %748 = vmatpush1.bf16.msra.mxu0 %v747_v48  ;;  %774 = vmatprep.subr.bf16.mxu1 %v749_v50 }
  0x57   :  { %750 = vmatprep.subr.bf16.mxu0 %v749_v50 }
  0x59   :  { %784 = vmatpush1.bf16.msra.mxu1 %v751_v55 }
  0x5a   :  { %752 = vmatpush1.bf16.msra.mxu0 %v751_v55  ;;  %775 = vmatprep.subr.bf16.mxu1 %v753_v56 }
  0x5b   :  { %754 = vmatprep.subr.bf16.mxu0 %v753_v56 }
  0x5d   :  { %785 = vmatpush1.bf16.msra.mxu1 %v755_v61 }
  0x5e   :  { %756 = vmatpush1.bf16.msra.mxu0 %v755_v61  ;;  %776 = vmatprep.subr.bf16.mxu1 %v757_v62  ;;  %v600_v61 = vld [vmem:[%s1455_s2] ss:$0 sm:$0xff]  ;;  %s834_s2 = smov [#allocation2]  }
  0x5f   :  { %758 = vmatprep.subr.bf16.mxu0 %v757_v62  ;;  %v833_v62 = vmov 0   ;;  %s588_s18 = sshll.u32 %s834_s2, 4  ;;  %s589_s18 = int_to_ptr.vmem [resolvable:$true] %s588_s18 }
  0x60   :  { %808 = vset.pattern.permute.xlu1 %v833_v62  ;;  %807 = vset.pattern.permute.xlu0 %v833_v62  ;;  %s809_s19 = scalar_lea.vmem %s589_s18, 16  ;;  %s813_s20 = scalar_lea.vmem %s589_s18, 32 }
  0x61   :  { %786 = vmatpush1.bf16.msra.mxu1 %v759_v3  ;;  %p810_p0 = scmp.ne.s32.totalorder %s589_s18, %s809_s19  ;;  %p814_p1 = scmp.lt.s32.totalorder %s589_s18, %s589_s18 }
  0x62   :  { %760 = vmatpush1.bf16.msra.mxu0 %v759_v3  ;;  %777 = vmatprep.subr.bf16.mxu1 %v761_v4  ;;  %p815_p2 = scmp.lt.s32.totalorder %s813_s20, %s809_s19 }
  0x63   :  { %762 = vmatprep.subr.bf16.mxu0 %v761_v4 }
  0x64   :  { %p816_p3 = por %p815_p2, %p814_p1 }
  0x65   :  { %787 = vmatpush1.bf16.msra.mxu1 %v763_v9 }
  0x66   :  { %764 = vmatpush1.bf16.msra.mxu0 %v763_v9  ;;  %778 = vmatprep.subr.bf16.mxu1 %v765_v10  ;;  %p817_p4 = pnand %p816_p3, %p810_p0 }
  0x67   :  { %766 = vmatprep.subr.bf16.mxu0 %v765_v10 }
  0x69   :  { %788 = vmatpush1.bf16.msra.mxu1 %v767_v13 }
  0x6a   :  { %768 = vmatpush1.bf16.msra.mxu0 %v767_v13  ;;  %v555_v13 = vshrl.u32 %v552_v11, 7 }
  0x6c   :  { %475 = vmatmul.mubr.f32.vlgmr.msra.gmra.mrb[8].mxu1 %v31_v14  ;;  %v558_v14 = vadd.s32 4294967288, %v553_v12 }
  0x6d   :  { %463 = vmatmul.mubr.f32.vlgmr.msra.gmra.mrb[0].mxu0 %v19_v15  ;;  %599 = vmatprep.mubr.msk.f32.mxu1 %vm207_vm0, %v38_v16  ;;  %v565_v16 = vadd.s32 4294967280, %v553_v12 }
  0x6e   :  { %597 = vmatprep.mubr.msk.f32.mxu0 %vm207_vm0, %v26_v17  ;;  %v556_v17 = vsub.s32 %v553_v12, %v555_v13 }
  0x70   :  { %481 = vmatmul.mubr.f32.gmra.mrb[10].mxu1 %v37_v18 }
  0x71   :  { %469 = vmatmul.mubr.f32.gmra.mrb[2].mxu0 %v25_v19  ;;  %v561_v19 = vsub.s32 %v558_v14, %v555_v13 }
 0x117   :  { %v286_v20 = vpop.f32.mrb[0].mxu1 }
 0x118   :  { %v288_v21 = vpop.f32.mrb[1].mxu1 }
 0x11b   :  { %v292_v22 = vpop.f32.mrb[2].mxu1 }
 0x11c   :  { %v294_v23 = vpop.f32.mrb[3].mxu1 }
 0x11f   :  { %v298_v24 = vpop.f32.mrb[4].mxu1 }
 0x120   :  { %v387_v25 = vpop.f32.mrb[4].mxu0  ;;  %v300_v26 = vpop.f32.mrb[5].mxu1 }
 0x121   :  { %v388_v27 = vadd.f32 %v387_v25, %v298_v24  ;;  %v389_v28 = vpop.f32.mrb[5].mxu0 }
 0x122   :  { %v390_v29 = vadd.f32 %v389_v28, %v300_v26 }
 0x123   :  { %v304_v30 = vpop.f32.mrb[6].mxu1 }
 0x124   :  { %v393_v31 = vpop.f32.mrb[6].mxu0  ;;  %v306_v32 = vpop.f32.mrb[7].mxu1 }
 0x125   :  { %v394_v33 = vadd.f32 %v393_v31, %v304_v30  ;;  %v395_v34 = vpop.f32.mrb[7].mxu0 }
 0x126   :  { %v396_v35 = vadd.f32 %v395_v34, %v306_v32 }
 0x13f   :  { %v476_v36 = vpop.f32.mrb[8].mxu1 }
 0x140   :  { %v464_v37 = vpop.f32.mrb[0].mxu0  ;;  %v477_v38 = vadd.f32 %v476_v36, %v388_v27  ;;  %v478_v39 = vpop.f32.mrb[9].mxu1 }
 0x141   :  { %v789_v40 = vadd.f32 %v464_v37, %v286_v20  ;;  %v466_v41 = vpop.f32.mrb[1].mxu0  ;;  %v479_v42 = vadd.f32 %v478_v39, %v390_v29  ;;  %v572_v20 = vadd.s32 4294967272, %v553_v12 }
 0x142   :  { %v790_v43 = vadd.f32 %v466_v41, %v288_v21  ;;  %v568_v21 = vsub.s32 %v565_v16, %v555_v13 }
 0x143   :  { %v482_v44 = vpop.f32.mrb[10].mxu1  ;;  %v496_v45 = vsel %vm487_vm1, %v479_v42, 0.0  ;;  %v575_v25 = vsub.s32 %v572_v20, %v555_v13 }
 0x144   :  { %v470_v46 = vpop.f32.mrb[2].mxu0  ;;  %v483_v47 = vadd.f32 %v482_v44, %v394_v33  ;;  %v484_v48 = vpop.f32.mrb[11].mxu1  ;;  %v488_v49 = vsel %vm487_vm1, %v790_v43, 0.0  ;;  %v497_v50 = vadd.f32 %v496_v45, %v477_v38 }
 0x145   :  { %v791_v51 = vadd.f32 %v470_v46, %v292_v22  ;;  %v472_v52 = vpop.f32.mrb[3].mxu0  ;;  %v485_v53 = vadd.f32 %v484_v48, %v396_v35  ;;  %v489_v54 = vadd.f32 %v789_v40, %v488_v49 }
 0x146   :  { %v792_v55 = vadd.f32 %v472_v52, %v294_v23  ;;  %498 = vadd.xlane.f32.xlu1 %v497_v50  ;;  %v501_v56 = vsel %vm500_vm2, %v483_v47, 0.0 }
 0x147   :  { %490 = vadd.xlane.f32.xlu0 %v489_v54  ;;  %v503_v57 = vsel %vm502_vm3, %v485_v53, 0.0 }
 0x148   :  { %v492_v58 = vsel %vm487_vm1, %v792_v55, 0.0  ;;  %v504_v59 = vadd.f32 %v503_v57, %v501_v56 }
 0x149   :  { %v493_v60 = vadd.f32 %v791_v51, %v492_v58 }
 0x14b   :  { %494 = vadd.xlane.f32.xlu0 %v493_v60 }
 0x157   :  { %518 = vbcast.lane.b32.xlu1 %v600_v61, 264 }
 0x15b   :  { %522 = vbcast.lane.b32.xlu1 %v600_v61, 272 }
 0x161   :  { %514 = vbcast.lane.b32.xlu0 %v600_v61, 256 }
 0x17f   :  { %505 = vadd.xlane.f32.xlu1 %v504_v59 }
 0x190   :  { %526 = vbcast.lane.b32.xlu1 %v600_v61, 280 }
 0x1d3   :  { %v499_v63 = vpop.xlane.xlu1 %498 }
 0x1d4   :  { %v491_v0 = vpop.xlane.xlu0 %490 }
 0x1d7   :  { %v519_v1 = vpop.permute.xlu1 %518 }
 0x1d8   :  { %v495_v2 = vpop.xlane.xlu0 %494 }
 0x1d9   :  { %v533_v3 = vadd.f32 %v519_v1, %v495_v2 }
 0x1db   :  { %544 = vperm.xlu1 %808, %v533_v3   ;;  %v523_v4 = vpop.permute.xlu1 %522 }
 0x1dc   :  { %v515_v5 = vpop.permute.xlu0 %514  ;;  %v534_v6 = vadd.f32 %v523_v4, %v499_v63 }
 0x1dd   :  { %v532_v7 = vadd.f32 %v515_v5, %v491_v0 }
 0x1df   :  { %541 = vperm.xlu0 %807, %v532_v7   ;;  %547 = vperm.xlu1 %808, %v534_v6  }
 0x20c   :  { %v506_v8 = vpop.xlane.xlu1 %505 }
 0x210   :  { %v527_v9 = vpop.permute.xlu1 %526 }
 0x211   :  { %v535_v10 = vadd.f32 %v527_v9, %v506_v8 }
 0x213   :  { %550 = vperm.xlu0 %807, %v535_v10  }
 0x25a   :  { %v545_v15 = vpop.permute.xlu1 %544 }
 0x25b   :  { %v562_v24 = vrot.slane %v545_v15, %v561_v19 }
 0x25e   :  { %v542_v18 = vpop.permute.xlu0 %541  ;;  %v548_v23 = vpop.permute.xlu1 %547 }
 0x25f   :  { %v557_v22 = vrot.slane %v542_v18, %v556_v17  ;;  %v569_v26 = vrot.slane %v548_v23, %v568_v21 }
 0x261   :  { %v564_v27 = vsel %vm563_vm4, %v562_v24, %v557_v22 }
 0x262   :  { %v571_v30 = vsel %vm570_vm5, %v569_v26, %v564_v27 }
 0x292   :  { %v551_v28 = vpop.permute.xlu0 %550 }
 0x293   :  { %v576_v29 = vrot.slane %v551_v28, %v575_v25 }
 0x295   :  { %v578_v31 = vsel %vm577_vm6, %v576_v29, %v571_v30 }
 0x296   :  { %581 = vst.msk [vmem:[#allocation2] sm:$0x1] %vm580_vm7, %v578_v31 }
 0x297   :  { %820 = shalt.err (!%p817_p4)
}
 0x298   :  { %s821_s23 = scalar_lea.hbm %s1456_s3, 16 }
 0x299   :  { %p822_p5 = scmp.ne.s32.totalorder %s1456_s3, %s821_s23  ;;  %p825_p6 = scmp.lt.u32.totalorder %s821_s23, %s1456_s3 }
 0x29b   :  { %p827_p7 = pnand %p825_p6, %p822_p5 }
 0x29d   :  { %830 = shalt.err (!%p827_p7)
}
 0x29e   :  { %591 = dma.vmem_to_hbm [thread:$0]  %s589_s18, 16, %s1456_s3, [#allocation3]  }
 0x29f   :  { %831 = dma.done.wait [#allocation3], 16  }
 0x2a0   :  { %832 = vsyncadd [#allocation3], 4294967280 }
 0x2a1   :  { %595 = vsyncpa [#allocation3], 1 }

</bundles_post_ra>
